<compile_context>
chip_gen: v7x
topology: tpu7x:2x2x1
jax: 0.10.0
libtpu: 0.0.40
codegen_flags: <defaults>
</compile_context>

<pallas_src>
import math

import jax
import jax.numpy as jnp
from jax.experimental import pallas as pl
from jax.experimental.pallas import tpu as pltpu

_LANE = 128


# ----------------------------------------------------------------------------
# Single-board kernel (matches the PyTorch module signature exactly).
# ----------------------------------------------------------------------------
def _battleship_loss_kernel(scalars_ref, board_ref, out_ref):
    # board_ref: lane-dense (rows, 128) f32 slab in VMEM (already f32, zero-padded).
    # scalars_ref: (2,) f32 in SMEM -> [repeated_guesses, action_index].
    # out_ref: (1, 1) f32 in SMEM.
    board = board_ref[...]
    total = jnp.sum(board)
    correct = jnp.sum((board == 2.0).astype(jnp.float32))
    # NOTE: relies on board values being exact integers in {0, 1, 2} (battleship contract);
    # padding zeros contribute nothing to either term.
    wrong = total - 2.0 * correct
    out_ref[0, 0] = (wrong + scalars_ref[0]) / (scalars_ref[1] + correct + 1e-6)


def _to_lane_dense(board_flat):
    """Pad a flat f32 board to a multiple of 128 and reshape to (rows, 128)."""
    n = board_flat.shape[0]
    n_pad = pl.cdiv(n, _LANE) * _LANE
    if n_pad != n:
        board_flat = jnp.pad(board_flat, (0, n_pad - n))
    return board_flat.reshape(n_pad // _LANE, _LANE)


def battleship_loss(current_board, repeated_guesses, action_index):
    """Single-board loss; mirrors BattleshipLoss.forward."""
    board = jnp.asarray(current_board, dtype=jnp.float32).reshape(-1)
    board2d = _to_lane_dense(board)
    scalars = jnp.stack(
        [
            jnp.asarray(repeated_guesses, jnp.float32).reshape(()),
            jnp.asarray(action_index, jnp.float32).reshape(()),
        ]
    )

    out = pl.pallas_call(
        _battleship_loss_kernel,
        out_shape=jax.ShapeDtypeStruct((1, 1), jnp.float32),
        in_specs=[
            pl.BlockSpec(memory_space=pltpu.MemorySpace.SMEM),  # [rg, ai]
            pl.BlockSpec(memory_space=pltpu.MemorySpace.VMEM),  # board slab (full block)
        ],
        out_specs=pl.BlockSpec(memory_space=pltpu.MemorySpace.SMEM),
    )(scalars, board2d)
    return out[0, 0]


# ----------------------------------------------------------------------------
# Batched kernel: B boards in one pallas_call (for RL loops that score many boards).
# Boards are laid out board-per-lane: (H*W, B_pad) with B_pad a multiple of 128.
# ----------------------------------------------------------------------------
def _battleship_loss_batched_kernel(board_ref, rg_ref, ai_ref, out_ref):
    board = board_ref[...]                                                 # (HW, TB)
    total = jnp.sum(board, axis=0, keepdims=True)                          # (1, TB)
    correct = jnp.sum((board == 2.0).astype(jnp.float32), axis=0, keepdims=True)
    wrong = total - 2.0 * correct                                          # values in {0,1,2}
    out_ref[...] = (wrong + rg_ref[...]) / (ai_ref[...] + correct + 1e-6)  # lane-dense store


def battleship_loss_batched(boards, repeated_guesses, action_index):
    """Per-board losses for a (B, H, W) stack in a single pallas_call."""
    boards = jnp.asarray(boards, dtype=jnp.float32)
    batch = boards.shape[0]
    hw = math.prod(boards.shape[1:])
    boards_flat = boards.reshape(batch, hw)

    rg = jnp.asarray(repeated_guesses, jnp.float32).reshape(batch)
    ai = jnp.asarray(action_index, jnp.float32).reshape(batch)

    b_pad = pl.cdiv(batch, _LANE) * _LANE
    pad = b_pad - batch
    if pad:
        boards_flat = jnp.pad(boards_flat, ((0, pad), (0, 0)))
        rg = jnp.pad(rg, (0, pad))
        ai = jnp.pad(ai, (0, pad))

    boards_t = boards_flat.T                 # (HW, B_pad): batch along lanes
    rg2 = rg.reshape(1, b_pad)
    ai2 = ai.reshape(1, b_pad)

    grid = (b_pad // _LANE,)
    out = pl.pallas_call(
        _battleship_loss_batched_kernel,
        out_shape=jax.ShapeDtypeStruct((1, b_pad), jnp.float32),
        grid_spec=pltpu.PrefetchScalarGridSpec(
            num_scalar_prefetch=0,
            grid=grid,
            in_specs=[
                pl.BlockSpec((hw, _LANE), lambda i: (0, i)),   # boards
                pl.BlockSpec((1, _LANE), lambda i: (0, i)),    # repeated_guesses
                pl.BlockSpec((1, _LANE), lambda i: (0, i)),    # action_index
            ],
            out_specs=pl.BlockSpec((1, _LANE), lambda i: (0, i)),
        ),
        compiler_params=pltpu.CompilerParams(
            dimension_semantics=("parallel",),   # shards board tiles across TCs on v7x
        ),
    )(boards_t, rg2, ai2)
    return out[0, :batch]


# ----------------------------------------------------------------------------
# Pure-JAX reference (mirrors the PyTorch forward exactly).
# ----------------------------------------------------------------------------
def _reference_loss(board, repeated_guesses, action_index):
    board = jnp.asarray(board, jnp.float32)
    correct = jnp.sum((board == 2.0).astype(jnp.float32))
    wrong = jnp.sum((board == 1.0).astype(jnp.float32))
    return (wrong + repeated_guesses) / (action_index + correct + 1e-6)


if __name__ == "__main__":
    key = jax.random.PRNGKey(0)
    k_board, k_batch, k_rg, k_ai = jax.random.split(key, 4)

    # --- single board (module semantics): values in {0,1,2} -----------------
    board = jax.random.randint(k_board, (16, 16), minval=0, maxval=3).astype(jnp.float32)
    repeated_guesses = jnp.float32(3.0)
    action_index = jnp.float32(7.0)

    loss = battleship_loss(board, repeated_guesses, action_index)
    loss = jax.block_until_ready(loss)
    ref = _reference_loss(board, repeated_guesses, action_index)
    assert jnp.allclose(loss, ref, rtol=1e-6, atol=1e-6), (loss, ref)

    # --- batched variant: 8 boards in one pallas_call ------------------------
    B = 8
    boards = jax.random.randint(k_batch, (B, 16, 16), minval=0, maxval=3).astype(jnp.float32)
    rgs = jax.random.randint(k_rg, (B,), minval=0, maxval=5).astype(jnp.float32)
    ais = jax.random.randint(k_ai, (B,), minval=1, maxval=20).astype(jnp.float32)

    losses = battleship_loss_batched(boards, rgs, ais)
    losses = jax.block_until_ready(losses)
    refs = jnp.stack([_reference_loss(boards[i], rgs[i], ais[i]) for i in range(B)])
    assert jnp.allclose(losses, refs, rtol=1e-6, atol=1e-6), (losses, refs)

    print("KERNEL_OK")
</pallas_src>

<mosaic_0001>
module attributes {stable_mosaic.version = 11 : i64} {
  func.func @_battleship_loss_kernel(%arg0: memref<2xf32, #tpu.memory_space<smem>>, %arg1: memref<2x128xf32, #tpu.memory_space<vmem>>, %arg2: memref<1x1xf32, #tpu.memory_space<smem>>) attributes {dimension_semantics = [], scalar_prefetch = 0 : i64, scratch_operands = 0 : i64, tpu.core_type = #tpu.core_type<tc>} {
    %c0 = arith.constant 0 : index
    %c0_0 = arith.constant 0 : index
    %0 = vector.load %arg1[%c0, %c0_0] : memref<2x128xf32, #tpu.memory_space<vmem>>, vector<2x128xf32>
    %1 = vector.shape_cast %0 : vector<2x128xf32> to vector<1x2x128xf32>
    %cst = arith.constant dense<0.000000e+00> : vector<1xf32>
    %2 = vector.multi_reduction <add>, %1, %cst [1, 2] : vector<1x2x128xf32> to vector<1xf32>
    %3 = vector.shape_cast %2 : vector<1xf32> to vector<1x1x1xf32>
    %4 = vector.extract %3[0, 0, 0] : f32 from vector<1x1x1xf32>
    %cst_1 = arith.constant 2.000000e+00 : f32
    %5 = vector.broadcast %cst_1 : f32 to vector<2x128xf32>
    %6 = arith.cmpf oeq, %0, %5 : vector<2x128xf32>
    %7 = arith.extui %6 : vector<2x128xi1> to vector<2x128xi32>
    %8 = arith.sitofp %7 : vector<2x128xi32> to vector<2x128xf32>
    %9 = vector.shape_cast %8 : vector<2x128xf32> to vector<1x2x128xf32>
    %cst_2 = arith.constant dense<0.000000e+00> : vector<1xf32>
    %10 = vector.multi_reduction <add>, %9, %cst_2 [1, 2] : vector<1x2x128xf32> to vector<1xf32>
    %11 = vector.shape_cast %10 : vector<1xf32> to vector<1x1x1xf32>
    %12 = vector.extract %11[0, 0, 0] : f32 from vector<1x1x1xf32>
    %cst_3 = arith.constant 2.000000e+00 : f32
    %13 = arith.mulf %cst_3, %12 : f32
    %14 = arith.subf %4, %13 : f32
    %c0_4 = arith.constant 0 : index
    %15 = memref.load %arg0[%c0_4] : memref<2xf32, #tpu.memory_space<smem>>
    %16 = arith.addf %14, %15 : f32
    %c1 = arith.constant 1 : index
    %17 = memref.load %arg0[%c1] : memref<2xf32, #tpu.memory_space<smem>>
    %18 = arith.addf %17, %12 : f32
    %cst_5 = arith.constant 9.99999997E-7 : f32
    %19 = arith.addf %18, %cst_5 : f32
    %20 = arith.divf %16, %19 : f32
    %c0_6 = arith.constant 0 : index
    %c0_7 = arith.constant 0 : index
    %21 = memref.load %arg2[%c0_6, %c0_7] : memref<1x1xf32, #tpu.memory_space<smem>>
    memref.store %20, %arg2[%c0_6, %c0_7] : memref<1x1xf32, #tpu.memory_space<smem>>
    return
  }
}

</mosaic_0001>

<bundles_post_ra>
// kernel: tpu_custom_call.1
= control target key start
LH: loop header
LB: loop body
LE: loop exit
PB: predicated region body
PF: predicated region fallthrough
CT: control target
= control target key end

     0   :  { %7 = vsyncpa [#allocation3], 0  ;;  %s157_s0 = inlined_call_operand.hbm [shape: f32[2], index: 0, kind: input, shape index: {}]   ;;  %s158_s1 = inlined_call_operand.vmem [shape: f32[2,128], index: 1, kind: input, shape index: {}]   ;;  %s159_s2 = inlined_call_operand.hbm [shape: f32[1,1], index: 2, kind: output, shape index: {}]  }
   0x1   :  { %8 = vsyncpa [#allocation4], 0  ;;  %s88_s11 = scalar_lea.hbm %s157_s0, 16 }
   0x2   :  { %p89_p0 = scmp.ne.s32.totalorder %s157_s0, %s88_s11  ;;  %p92_p1 = scmp.lt.u32.totalorder %s88_s11, %s157_s0 }
   0x4   :  { %p94_p2 = pnand %p92_p1, %p89_p0 }
   0x6   :  { %97 = shalt.err (!%p94_p2)
}
   0x7   :  { %s112_s16 = smov [#allocation2]  }
   0x8   :  { %16 = dma.hbm_to_smem %s157_s0, 16, %s112_s16, [#allocation3]  }
   0x9   :  { %108 = dma.done.wait [#allocation3], 16  }
   0xa   :  { %109 = vsyncadd [#allocation3], 4294967280 }
   0xb   :  { %22 = sfence }
   0xc   :  { %v23_v0 = vld [vmem:[%s158_s1] sm:$0x3]  ;;  %vm24_vm0 = vcmask 1041408   ;;  %v113_v2 = vmov 0.0   ;;  %s76_s0 = sld [smem:[#allocation2 + $0x1]]  ;;  %s50_s25 = sld [smem:[#allocation2]] }
   0xd   :  { %v25_v1 = vsel %vm24_vm0, %v23_v0, 0.0  ;;  %vm35_vm1 = vcmp.eq.f32.partialorder %v23_v0, 2.0  ;;  %s98_s4 = scalar_lea.hbm %s159_s2, 16 }
   0xe   :  { %26 = vadd.xlane.f32.xlu0 %v25_v1  ;;  %v75_v3 = vsel %vm35_vm1, 1.0, %v113_v2  ;;  %p99_p3 = scmp.ne.s32.totalorder %s159_s2, %s98_s4  ;;  %p102_p4 = scmp.lt.u32.totalorder %s98_s4, %s159_s2 }
   0xf   :  { %v38_v4 = vsel %vm24_vm0, %v75_v3, 0.0 }
  0x10   :  { %p104_p5 = pnand %p102_p4, %p99_p3 }
  0x12   :  { %39 = vadd.xlane.f32.xlu0 %v38_v4 }
  0x9b   :  { %v27_v5 = vpop.xlane.xlu0 %26 }
  0x9c   :  { %v28_v6 = vrot.slane %v27_v5, 4 }
  0x9e   :  { %v29_v7 = vadd.f32 %v28_v6, %v27_v5 }
  0x9f   :  { %v40_v8 = vpop.xlane.xlu0 %39 }
  0xa0   :  { %v30_v9 = vrot.slane %v29_v7, 2  ;;  %v41_v10 = vrot.slane %v40_v8, 4 }
  0xa2   :  { %v42_v11 = vadd.f32 %v41_v10, %v40_v8  ;;  %v31_v12 = vadd.f32 %v30_v9, %v29_v7 }
  0xa4   :  { %v43_v13 = vrot.slane %v42_v11, 2  ;;  %v32_v14 = vrot.slane %v31_v12, 1 }
  0xa6   :  { %v44_v15 = vadd.f32 %v43_v13, %v42_v11  ;;  %v33_v16 = vadd.f32 %v32_v14, %v31_v12 }
  0xa8   :  { %77 = vpush %v33_v16  ;;  %v45_v17 = vrot.slane %v44_v15, 1 }
  0xaa   :  { %v46_v18 = vadd.f32 %v45_v17, %v44_v15 }
  0xac   :  { %79 = vpush %v46_v18 }
  0xd9   :  { %s78_s1 = spop %77 }
  0xdd   :  { %s80_s21 = spop %79 }
  0xde   :  { %s53_s22 = sadd.f32 %s80_s21, %s76_s0  ;;  %s48_s24 = smul.f32 2.0, %s80_s21 }
  0xe0   :  { %s54_s23 = sadd.f32 1e-06, %s53_s22 }
  0xe1   :  { %s49_s26 = ssub.f32 %s78_s1, %s48_s24 }
  0xe2   :  { %v55_v19 = vstv %s54_s23 }
  0xe3   :  { %86 = vrcp.f32 %v55_v19  ;;  %s51_s27 = sadd.f32 %s50_s25, %s49_s26 }
  0xed   :  { %v87_v20 = vpop.eup %86 }
  0xee   :  { %81 = vpush %v87_v20 }
 0x11f   :  { %s82_s28 = spop %81 }
 0x120   :  { %s58_s29 = smul.f32 %s82_s28, %s51_s27 }
 0x122   :  { %60 = sst [smem:[#allocation5]] %s58_s29 }
 0x123   :  { %107 = shalt.err (!%p104_p5)
}
 0x124   :  { %s114_s9 = smov [#allocation5]  }
 0x125   :  { %68 = dma.smem_to_hbm %s114_s9, 16, %s159_s2, [#allocation4]  }
 0x126   :  { %110 = dma.done.wait [#allocation4], 16  }
 0x127   :  { %111 = vsyncadd [#allocation4], 4294967280 }
 0x128   :  { %72 = sfence }
 0x129   :  { %73 = vsyncpa [#allocation3], 1 }
 0x12a   :  { %74 = vsyncpa [#allocation4], 1 }

</bundles_post_ra>
